<compile_context>
chip_gen: v5e
topology: v5e:2x2
jax: 0.10.0
libtpu: 0.0.40
codegen_flags: <defaults>
</compile_context>

<pallas_src>
import functools

import jax
import jax.numpy as jnp
from jax.experimental import pallas as pl
from jax.experimental.pallas import tpu as pltpu


def _convt_kernel(x_ref, t_ref, b_ref, o_ref, xpad_ref, *,
                  H, stride, pad_top, kH, Hout):
    """One batch element of the complex-folded transposed conv.

    x_ref   : (1, H, W*Cin2)            compact input (lane dim = W*2Cin)
    t_ref   : (kH, W*Cin2, Wout*Cout2)  Toeplitz-along-W weight (H-flipped)
    b_ref   : (1, Wout*Cout2)           bias tiled over Wout
    o_ref   : (1, Hout, Wout*Cout2)     lane-dense output
    xpad_ref: (Hp, W*Cin2)              VMEM scratch: H-dilated + H-padded input
    """
    wc_out = o_ref.shape[2]

    # Build the H-dilated, H-padded tile in VMEM (no zero-inflated HBM array).
    xpad_ref[...] = jnp.zeros_like(xpad_ref)
    for ih in range(H):                      # small static loop (H rows)
        row = pad_top + ih * stride
        xpad_ref[row:row + 1, :] = x_ref[0, ih:ih + 1, :]

    # kH accumulating MXU matmuls; W taps + channels live in the K dimension.
    acc = jnp.zeros((Hout, wc_out), dtype=jnp.float32)
    for j in range(kH):                      # small static loop (kH slabs)
        acc = acc + jnp.dot(xpad_ref[j:j + Hout, :], t_ref[j],
                            preferred_element_type=jnp.float32)

    res = (acc + b_ref[...]).astype(o_ref.dtype)
    o_ref[...] = res.reshape(1, Hout, wc_out)


def cconv_transpose2d(x, w_real, w_imag, b_real, b_imag,
                      *, stride, padding=0, output_padding=0):
    """Forward of CConvTranspose2d.

    x:       (N, Cin, H, W, 2)   float32, last axis = [real, imag]
    w_real:  (Cin, Cout, kH, kW) real-branch ConvTranspose2d weight
    w_imag:  (Cin, Cout, kH, kW) imag-branch ConvTranspose2d weight
    b_real:  (Cout,)             real-branch bias
    b_imag:  (Cout,)             imag-branch bias
    returns: (N, Cout, Hout, Wout, 2)
    """
    N, Cin, H, W, _ = x.shape
    _, Cout, kH, kW = w_real.shape
    s, p, op = stride, padding, output_padding
    Cin2, Cout2 = 2 * Cin, 2 * Cout

    Hout = (H - 1) * s - 2 * p + kH + op
    Wout = (W - 1) * s - 2 * p + kW + op

    pad_top = kH - 1 - p
    assert pad_top >= 0, "padding > kernel_size - 1 not supported"
    Hp = Hout + kH - 1                      # rows of the H-dilated+padded tile

    # ---- complex -> single real conv with 2Cin in / 2Cout out channels ----
    x_big = jnp.concatenate([x[..., 0], x[..., 1]], axis=1)       # (N, 2Cin, H, W)
    x_big = jnp.transpose(x_big, (0, 2, 3, 1))                    # (N, H, W, 2Cin)
    x_flat = x_big.reshape(N, H, W * Cin2)                        # lane dim = W*2Cin

    w_top = jnp.concatenate([w_real, w_imag], axis=1)
    w_bot = jnp.concatenate([-w_imag, w_real], axis=1)
    w_big = jnp.concatenate([w_top, w_bot], axis=0)               # (2Cin, 2Cout, kH, kW)
    b_big = jnp.concatenate([b_real - b_imag, b_real + b_imag])   # (2Cout,)

    # ---- Toeplitz-along-W weight: absorbs W stride/pad + channel contraction.
    # T[j, iw*Cin2+ci, ow*Cout2+co] = w_big[ci, co, kH-1-j, ow + p - iw*s] (if valid)
    w_hwio = jnp.transpose(w_big, (2, 3, 0, 1))[::-1]             # (kH,kW,Cin2,Cout2), H-flip
    iw = jnp.arange(W)[:, None]
    ow = jnp.arange(Wout)[None, :]
    kw_idx = ow + p - iw * s                                      # (W, Wout)
    valid = (kw_idx >= 0) & (kw_idx < kW)
    t_gather = w_hwio[:, jnp.clip(kw_idx, 0, kW - 1)]             # (kH,W,Wout,Cin2,Cout2)
    t_gather = jnp.where(valid[None, :, :, None, None], t_gather, 0.0)
    t_mat = jnp.transpose(t_gather, (0, 1, 3, 2, 4)).reshape(kH, W * Cin2, Wout * Cout2)

    b_row = jnp.tile(b_big, Wout).reshape(1, Wout * Cout2)

    # ---- Pallas kernel: per-batch transposed conv as kH dense matmuls ----
    kern = functools.partial(_convt_kernel, H=H, stride=s, pad_top=pad_top,
                             kH=kH, Hout=Hout)
    out_flat = pl.pallas_call(
        kern,
        out_shape=jax.ShapeDtypeStruct((N, Hout, Wout * Cout2), jnp.float32),
        grid_spec=pltpu.PrefetchScalarGridSpec(
            num_scalar_prefetch=0,
            grid=(N,),
            in_specs=[
                pl.BlockSpec((1, H, W * Cin2), lambda n: (n, 0, 0)),
                pl.BlockSpec((kH, W * Cin2, Wout * Cout2), lambda n: (0, 0, 0)),
                pl.BlockSpec((1, Wout * Cout2), lambda n: (0, 0)),
            ],
            out_specs=pl.BlockSpec((1, Hout, Wout * Cout2), lambda n: (n, 0, 0)),
            scratch_shapes=[pltpu.VMEM((Hp, W * Cin2), jnp.float32)],
        ),
        compiler_params=pltpu.CompilerParams(
            dimension_semantics=("parallel",)),
    )(x_flat, t_mat, b_row)

    # ---- back to PyTorch layout (N, Cout, Hout, Wout, 2) ----
    out = out_flat.reshape(N, Hout, Wout, Cout2)
    out_real = jnp.transpose(out[..., :Cout], (0, 3, 1, 2))
    out_imag = jnp.transpose(out[..., Cout:], (0, 3, 1, 2))
    return jnp.stack([out_real, out_imag], axis=-1)


def _reference(x, w_real, w_imag, b_real, b_imag, *, stride, padding, output_padding):
    """Pure-JAX reference using lax.conv_general_dilated (for sanity check)."""
    N, Cin, H, W, _ = x.shape
    _, Cout, kH, kW = w_real.shape
    s, p, op = stride, padding, output_padding

    def convt(inp, w, b):
        # PyTorch ConvTranspose2d == correlation of stride-dilated input with
        # the spatially-flipped, (in,out)-swapped kernel.
        w_oihw = jnp.transpose(w[:, :, ::-1, ::-1], (1, 0, 2, 3))  # (Cout, Cin, kH, kW)
        y = jax.lax.conv_general_dilated(
            inp, w_oihw,
            window_strides=(1, 1),
            padding=[(kH - 1 - p, kH - 1 - p + op), (kW - 1 - p, kW - 1 - p + op)],
            lhs_dilation=(s, s),
            dimension_numbers=("NCHW", "OIHW", "NCHW"))
        return y + b[None, :, None, None]

    x_r, x_i = x[..., 0], x[..., 1]
    ct_real = convt(x_r, w_real, b_real) - convt(x_i, w_imag, b_imag)
    ct_imag = convt(x_r, w_imag, b_imag) + convt(x_i, w_real, b_real)
    return jnp.stack([ct_real, ct_imag], axis=-1)


if __name__ == "__main__":
    # module config (small, consistent with a typical decoder block)
    N, Cin, Cout = 2, 4, 4
    H = W = 8
    kernel_size, stride, padding, output_padding = 3, 2, 1, 1

    key = jax.random.PRNGKey(0)
    k_x, k_wr, k_wi, k_br, k_bi = jax.random.split(key, 5)

    # deterministic synthetic parameters (xavier-uniform-like bounds)
    fan_in = Cout * kernel_size * kernel_size
    fan_out = Cin * kernel_size * kernel_size
    bound = (6.0 / (fan_in + fan_out)) ** 0.5
    w_real = jax.random.uniform(k_wr, (Cin, Cout, kernel_size, kernel_size),
                                jnp.float32, -bound, bound)
    w_imag = jax.random.uniform(k_wi, (Cin, Cout, kernel_size, kernel_size),
                                jnp.float32, -bound, bound)
    b_bound = 1.0 / (fan_in ** 0.5)
    b_real = jax.random.uniform(k_br, (Cout,), jnp.float32, -b_bound, b_bound)
    b_imag = jax.random.uniform(k_bi, (Cout,), jnp.float32, -b_bound, b_bound)

    x = jax.random.normal(k_x, (N, Cin, H, W, 2), jnp.float32)

    out = cconv_transpose2d(x, w_real, w_imag, b_real, b_imag,
                            stride=stride, padding=padding,
                            output_padding=output_padding)
    out = jax.block_until_ready(out)

    ref = _reference(x, w_real, w_imag, b_real, b_imag,
                     stride=stride, padding=padding,
                     output_padding=output_padding)
    ref = jax.block_until_ready(ref)

    assert out.shape == ref.shape, (out.shape, ref.shape)
    assert jnp.max(jnp.abs(out - ref)) < 1e-4, float(jnp.max(jnp.abs(out - ref)))

    print("KERNEL_OK")
</pallas_src>

<mosaic_0001>
module attributes {stable_mosaic.version = 11 : i64} {
  func.func @_convt_kernel(%arg0: i32, %arg1: memref<1x8x64xf32, #tpu.memory_space<vmem>>, %arg2: memref<3x64x128xf32, #tpu.memory_space<vmem>>, %arg3: memref<1x128xf32, #tpu.memory_space<vmem>>, %arg4: memref<1x16x128xf32, #tpu.memory_space<vmem>>, %arg5: memref<18x64xf32, #tpu.memory_space<vmem>>) attributes {dimension_semantics = [#tpu.dimension_semantics<parallel>], iteration_bounds = array<i64: 2>, scalar_prefetch = 0 : i64, scratch_operands = 1 : i64, tpu.core_type = #tpu.core_type<tc>, window_params = [{transform_indices = @transform_0, window_bounds = array<i64: 1, 8, 64>}, {pipeline_mode = #tpu.pipeline_mode<synchronous>, transform_indices = @transform_1, window_bounds = array<i64: 3, 64, 128>}, {pipeline_mode = #tpu.pipeline_mode<synchronous>, transform_indices = @transform_2, window_bounds = array<i64: 1, 128>}, {transform_indices = @transform_3, window_bounds = array<i64: 1, 16, 128>}]} {
    %cst = arith.constant 0.000000e+00 : f32
    %0 = vector.broadcast %cst : f32 to vector<18x64xf32>
    %c0 = arith.constant 0 : index
    %c0_0 = arith.constant 0 : index
    %1 = vector.load %arg5[%c0, %c0_0] : memref<18x64xf32, #tpu.memory_space<vmem>>, vector<18x64xf32>
    tpu.vector_store %arg5[%c0, %c0_0], %0 {strides = array<i32>} : memref<18x64xf32, #tpu.memory_space<vmem>>, vector<18x64xf32>,
    %c0_1 = arith.constant 0 : index
    %c0_2 = arith.constant 0 : index
    %c0_3 = arith.constant 0 : index
    %2 = vector.load %arg1[%c0_1, %c0_2, %c0_3] : memref<1x8x64xf32, #tpu.memory_space<vmem>>, vector<1x1x64xf32>
    %3 = vector.shape_cast %2 : vector<1x1x64xf32> to vector<1x64xf32>
    %c1 = arith.constant 1 : index
    %c0_4 = arith.constant 0 : index
    %4 = vector.load %arg5[%c1, %c0_4] : memref<18x64xf32, #tpu.memory_space<vmem>>, vector<1x64xf32>
    tpu.vector_store %arg5[%c1, %c0_4], %3 {strides = array<i32>} : memref<18x64xf32, #tpu.memory_space<vmem>>, vector<1x64xf32>,
    %c0_5 = arith.constant 0 : index
    %c1_6 = arith.constant 1 : index
    %c0_7 = arith.constant 0 : index
    %5 = vector.load %arg1[%c0_5, %c1_6, %c0_7] : memref<1x8x64xf32, #tpu.memory_space<vmem>>, vector<1x1x64xf32>
    %6 = vector.shape_cast %5 : vector<1x1x64xf32> to vector<1x64xf32>
    %c3 = arith.constant 3 : index
    %c0_8 = arith.constant 0 : index
    %7 = vector.load %arg5[%c3, %c0_8] : memref<18x64xf32, #tpu.memory_space<vmem>>, vector<1x64xf32>
    tpu.vector_store %arg5[%c3, %c0_8], %6 {strides = array<i32>} : memref<18x64xf32, #tpu.memory_space<vmem>>, vector<1x64xf32>,
    %c0_9 = arith.constant 0 : index
    %c2 = arith.constant 2 : index
    %c0_10 = arith.constant 0 : index
    %8 = vector.load %arg1[%c0_9, %c2, %c0_10] : memref<1x8x64xf32, #tpu.memory_space<vmem>>, vector<1x1x64xf32>
    %9 = vector.shape_cast %8 : vector<1x1x64xf32> to vector<1x64xf32>
    %c5 = arith.constant 5 : index
    %c0_11 = arith.constant 0 : index
    %10 = vector.load %arg5[%c5, %c0_11] : memref<18x64xf32, #tpu.memory_space<vmem>>, vector<1x64xf32>
    tpu.vector_store %arg5[%c5, %c0_11], %9 {strides = array<i32>} : memref<18x64xf32, #tpu.memory_space<vmem>>, vector<1x64xf32>,
    %c0_12 = arith.constant 0 : index
    %c3_13 = arith.constant 3 : index
    %c0_14 = arith.constant 0 : index
    %11 = vector.load %arg1[%c0_12, %c3_13, %c0_14] : memref<1x8x64xf32, #tpu.memory_space<vmem>>, vector<1x1x64xf32>
    %12 = vector.shape_cast %11 : vector<1x1x64xf32> to vector<1x64xf32>
    %c7 = arith.constant 7 : index
    %c0_15 = arith.constant 0 : index
    %13 = vector.load %arg5[%c7, %c0_15] : memref<18x64xf32, #tpu.memory_space<vmem>>, vector<1x64xf32>
    tpu.vector_store %arg5[%c7, %c0_15], %12 {strides = array<i32>} : memref<18x64xf32, #tpu.memory_space<vmem>>, vector<1x64xf32>,
    %c0_16 = arith.constant 0 : index
    %c4 = arith.constant 4 : index
    %c0_17 = arith.constant 0 : index
    %14 = vector.load %arg1[%c0_16, %c4, %c0_17] : memref<1x8x64xf32, #tpu.memory_space<vmem>>, vector<1x1x64xf32>
    %15 = vector.shape_cast %14 : vector<1x1x64xf32> to vector<1x64xf32>
    %c9 = arith.constant 9 : index
    %c0_18 = arith.constant 0 : index
    %16 = vector.load %arg5[%c9, %c0_18] : memref<18x64xf32, #tpu.memory_space<vmem>>, vector<1x64xf32>
    tpu.vector_store %arg5[%c9, %c0_18], %15 {strides = array<i32>} : memref<18x64xf32, #tpu.memory_space<vmem>>, vector<1x64xf32>,
    %c0_19 = arith.constant 0 : index
    %c5_20 = arith.constant 5 : index
    %c0_21 = arith.constant 0 : index
    %17 = vector.load %arg1[%c0_19, %c5_20, %c0_21] : memref<1x8x64xf32, #tpu.memory_space<vmem>>, vector<1x1x64xf32>
    %18 = vector.shape_cast %17 : vector<1x1x64xf32> to vector<1x64xf32>
    %c11 = arith.constant 11 : index
    %c0_22 = arith.constant 0 : index
    %19 = vector.load %arg5[%c11, %c0_22] : memref<18x64xf32, #tpu.memory_space<vmem>>, vector<1x64xf32>
    tpu.vector_store %arg5[%c11, %c0_22], %18 {strides = array<i32>} : memref<18x64xf32, #tpu.memory_space<vmem>>, vector<1x64xf32>,
    %c0_23 = arith.constant 0 : index
    %c6 = arith.constant 6 : index
    %c0_24 = arith.constant 0 : index
    %20 = vector.load %arg1[%c0_23, %c6, %c0_24] : memref<1x8x64xf32, #tpu.memory_space<vmem>>, vector<1x1x64xf32>
    %21 = vector.shape_cast %20 : vector<1x1x64xf32> to vector<1x64xf32>
    %c13 = arith.constant 13 : index
    %c0_25 = arith.constant 0 : index
    %22 = vector.load %arg5[%c13, %c0_25] : memref<18x64xf32, #tpu.memory_space<vmem>>, vector<1x64xf32>
    tpu.vector_store %arg5[%c13, %c0_25], %21 {strides = array<i32>} : memref<18x64xf32, #tpu.memory_space<vmem>>, vector<1x64xf32>,
    %c0_26 = arith.constant 0 : index
    %c7_27 = arith.constant 7 : index
    %c0_28 = arith.constant 0 : index
    %23 = vector.load %arg1[%c0_26, %c7_27, %c0_28] : memref<1x8x64xf32, #tpu.memory_space<vmem>>, vector<1x1x64xf32>
    %24 = vector.shape_cast %23 : vector<1x1x64xf32> to vector<1x64xf32>
    %c15 = arith.constant 15 : index
    %c0_29 = arith.constant 0 : index
    %25 = vector.load %arg5[%c15, %c0_29] : memref<18x64xf32, #tpu.memory_space<vmem>>, vector<1x64xf32>
    tpu.vector_store %arg5[%c15, %c0_29], %24 {strides = array<i32>} : memref<18x64xf32, #tpu.memory_space<vmem>>, vector<1x64xf32>,
    %cst_30 = arith.constant 0.000000e+00 : f32
    %26 = vector.broadcast %cst_30 : f32 to vector<16x128xf32>
    %c0_31 = arith.constant 0 : index
    %c0_32 = arith.constant 0 : index
    %27 = vector.load %arg5[%c0_31, %c0_32] : memref<18x64xf32, #tpu.memory_space<vmem>>, vector<16x64xf32>
    %c0_33 = arith.constant 0 : index
    %c0_34 = arith.constant 0 : index
    %c0_35 = arith.constant 0 : index
    %28 = vector.load %arg2[%c0_33, %c0_34, %c0_35] : memref<3x64x128xf32, #tpu.memory_space<vmem>>, vector<1x64x128xf32>
    %29 = vector.shape_cast %28 : vector<1x64x128xf32> to vector<64x128xf32>
    %cst_36 = arith.constant dense<0.000000e+00> : vector<16x128xf32>
    %30 = tpu.matmul %27, %29, %cst_36 {dimension_numbers = #tpu.dot_dimension_numbers<[1], [0], [0], [1], [0, 0, 1, 1], [], []>} : vector<16x64xf32>, vector<64x128xf32>, vector<16x128xf32> -> vector<16x128xf32>
    %31 = arith.addf %26, %30 : vector<16x128xf32>
    %c1_37 = arith.constant 1 : index
    %c0_38 = arith.constant 0 : index
    %32 = vector.load %arg5[%c1_37, %c0_38] : memref<18x64xf32, #tpu.memory_space<vmem>>, vector<16x64xf32>
    %c1_39 = arith.constant 1 : index
    %c0_40 = arith.constant 0 : index
    %c0_41 = arith.constant 0 : index
    %33 = vector.load %arg2[%c1_39, %c0_40, %c0_41] : memref<3x64x128xf32, #tpu.memory_space<vmem>>, vector<1x64x128xf32>
    %34 = vector.shape_cast %33 : vector<1x64x128xf32> to vector<64x128xf32>
    %cst_42 = arith.constant dense<0.000000e+00> : vector<16x128xf32>
    %35 = tpu.matmul %32, %34, %cst_42 {dimension_numbers = #tpu.dot_dimension_numbers<[1], [0], [0], [1], [0, 0, 1, 1], [], []>} : vector<16x64xf32>, vector<64x128xf32>, vector<16x128xf32> -> vector<16x128xf32>
    %36 = arith.addf %31, %35 : vector<16x128xf32>
    %c2_43 = arith.constant 2 : index
    %c0_44 = arith.constant 0 : index
    %37 = vector.load %arg5[%c2_43, %c0_44] : memref<18x64xf32, #tpu.memory_space<vmem>>, vector<16x64xf32>
    %c2_45 = arith.constant 2 : index
    %c0_46 = arith.constant 0 : index
    %c0_47 = arith.constant 0 : index
    %38 = vector.load %arg2[%c2_45, %c0_46, %c0_47] : memref<3x64x128xf32, #tpu.memory_space<vmem>>, vector<1x64x128xf32>
    %39 = vector.shape_cast %38 : vector<1x64x128xf32> to vector<64x128xf32>
    %cst_48 = arith.constant dense<0.000000e+00> : vector<16x128xf32>
    %40 = tpu.matmul %37, %39, %cst_48 {dimension_numbers = #tpu.dot_dimension_numbers<[1], [0], [0], [1], [0, 0, 1, 1], [], []>} : vector<16x64xf32>, vector<64x128xf32>, vector<16x128xf32> -> vector<16x128xf32>
    %41 = arith.addf %36, %40 : vector<16x128xf32>
    %c0_49 = arith.constant 0 : index
    %c0_50 = arith.constant 0 : index
    %42 = vector.load %arg3[%c0_49, %c0_50] : memref<1x128xf32, #tpu.memory_space<vmem>>, vector<1x128xf32>
    %43 = vector.broadcast %42 : vector<1x128xf32> to vector<16x128xf32>
    %44 = arith.addf %41, %43 : vector<16x128xf32>
    %45 = vector.shape_cast %44 : vector<16x128xf32> to vector<1x16x128xf32>
    %c0_51 = arith.constant 0 : index
    %c0_52 = arith.constant 0 : index
    %c0_53 = arith.constant 0 : index
    %46 = vector.load %arg4[%c0_51, %c0_52, %c0_53] : memref<1x16x128xf32, #tpu.memory_space<vmem>>, vector<1x16x128xf32>
    tpu.vector_store %arg4[%c0_51, %c0_52, %c0_53], %45 {strides = array<i32>} : memref<1x16x128xf32, #tpu.memory_space<vmem>>, vector<1x16x128xf32>,
    return
  }
  func.func @transform_0(%arg0: i32) -> (i32, i32, i32) {
    %c0_i32 = arith.constant 0 : i32
    %c0_i32_0 = arith.constant 0 : i32
    %c0_i32_1 = arith.constant 0 : i32
    return %arg0, %c0_i32, %c0_i32_0 : i32, i32, i32
  }
  func.func @transform_1(%arg0: i32) -> (i32, i32, i32) {
    %c0_i32 = arith.constant 0 : i32
    %c0_i32_0 = arith.constant 0 : i32
    %c0_i32_1 = arith.constant 0 : i32
    %c0_i32_2 = arith.constant 0 : i32
    return %c0_i32, %c0_i32_0, %c0_i32_1 : i32, i32, i32
  }
  func.func @transform_2(%arg0: i32) -> (i32, i32) {
    %c0_i32 = arith.constant 0 : i32
    %c0_i32_0 = arith.constant 0 : i32
    %c0_i32_1 = arith.constant 0 : i32
    return %c0_i32, %c0_i32_0 : i32, i32
  }
  func.func @transform_3(%arg0: i32) -> (i32, i32, i32) {
    %c0_i32 = arith.constant 0 : i32
    %c0_i32_0 = arith.constant 0 : i32
    %c0_i32_1 = arith.constant 0 : i32
    return %arg0, %c0_i32, %c0_i32_0 : i32, i32, i32
  }
}

</mosaic_0001>

<bundles_post_ra>
// kernel: tpu_custom_call.1
= control target key start
LH: loop header
LB: loop body
LE: loop exit
PB: predicated region body
PF: predicated region fallthrough
CT: control target
= control target key end

     0   :  { %8 = vsyncpa [#allocation4], 0  ;;  %s872_s0 = inlined_call_operand.hbm [shape: f32[2,8,64], index: 0, kind: input, shape index: {}]   ;;  %s873_s1 = inlined_call_operand.hbm [shape: f32[3,64,128], index: 1, kind: input, shape index: {}]   ;;  %s874_s2 = inlined_call_operand.vmem [shape: f32[1,128], index: 2, kind: input, shape index: {}]   ;;  %s875_s3 = inlined_call_operand.hbm [shape: f32[2,16,128], index: 3, kind: output, shape index: {}]  }
   0x1   :  { %10 = vsyncpa [#allocation4 + $0x1], 0 }
   0x2   :  { %11 = vsyncpa [#allocation7], 0 }
   0x3   :  { %12 = vsyncpa [#allocation5], 0 }
   0x4   :  { %14 = vsyncpa [#allocation5 + $0x1], 0  ;;  %s706_s12 = smov 0   ;;  %s708_s13 = smov 0  }
   0x5   :  { %s710_s14 = smov 0   ;;  %s712_s15 = smov 0  }
   0x6 LB: > { %s130_s18 = sshll.u32 %s873_s1, 4  ;;  %s730_s19 = sadd.s32 4294967295, %s678_s15   ;;  %s678_s15 = sphi %s712_s15, %s885_s15   ;;  %s674_s14 = sphi %s710_s14, %s884_s14   ;;  %s670_s13 = sphi %s708_s13, %s883_s13   ;;  %s666_s12 = sphi %s706_s12, %s882_s12   ;;  %s131_s18 = int_to_ptr.hbm [resolvable:$true] %s130_s18 }
   0x7   : > { %p456_p0 = scmp.ge.s32.totalorder %s678_s15, 1  ;;  %p41_p1 = scmp.eq.s32.totalorder %s730_s19, 0 }
   0x8   : > { %p119_p2 = scmp.lt.s32.totalorder %s678_s15, 3  ;;  %s680_s21 = smov [#allocation6]  }
   0x9   : > { %s132_s22 = sshll.u32 %s680_s21, 4  ;;  %s681_s23 = smov 128   ;;  %s133_s22 = int_to_ptr.vmem [resolvable:$true] %s132_s22 }
   0xa   : > { %p735_p3 = pnand %p456_p0, %p119_p2  ;;  %s682_s24 = smov 8  }
   0xb   : > { %s455_s25 = sadd.s32 4294967294, %s678_s15   ;;  %s746_s26 = sadd.s32 1, %s678_s15  }
   0xc   : > { %p493_p4 = pneg %p735_p3  ;;  %s27_s27 = sadd.s32 1, %s674_s14 }
   0xd   : > { %s24_s28 = ssub.s32 %s678_s15, %s746_s26  ;;  %p34_p7 = scmp.ne.s32.totalorder %s674_s14, %s670_s13 }
   0xe   : > { %p494_p6 = pnand %p493_p4, %p41_p1  ;;  %p25_p8 = scmp.eq.s32.totalorder %s24_s28, 0 }
   0xf   : > { %p35_p9 = scmp.eq.s32.totalorder %s678_s15, 0  ;;  %p40_p10 = scmp.ne.s32.totalorder %s670_s13, %s666_s12 }
  0x10   : > { %496 = dma.hbm_to_vmem [thread:$0]  (!%p494_p6), %s131_s18, 3072, %s133_s22, [#allocation7], %s681_s23, %s681_s23, %s682_s24  }
  0x11   : > { %p106_p11 = scmp.eq.s32.totalorder %s730_s19, 1  ;;  %p762_p12 = por %p41_p1, %p40_p10 }
  0x12   : > { %s758_s29 = scalar_select %p25_p8, %s674_s14, %s27_s27  }
  0x13   : > { %p766_p13 = por %p106_p11, %p34_p7  ;;  %p112_p0 = scmp.eq.s32.totalorder %s455_s25, 1 }
  0x14   : > { %p36_p2 = por %p35_p9, %p34_p7  ;;  %s149_s5 = sand.u32 1, %s674_s14  }
  0x15   : > { %p771_p4 = por %p112_p0, %p40_p10  ;;  %p506_p6 = scmp.lt.s32.totalorder %s678_s15, 2 }
  0x16   : > { %s459_s7 = sshll.u32 %s149_s5, 3  ;;  %s460_s8 = sshll.u32 %s678_s15, 3 }
  0x17   : > { %s157_s11 = scalar_lea.hbm %s872_s0, %s460_s8  ;;  %s153_s17 = scalar_lea.vmem [#allocation3], %s459_s7 }
  0x18   : > { %s159_s16 = sshll.u32 %s157_s11, 4  ;;  %s161_s18 = sshll.u32 %s153_s17, 4  ;;  %s160_s16 = int_to_ptr.hbm [resolvable:$true] %s159_s16  ;;  %s162_s18 = int_to_ptr.vmem [resolvable:$true] %s161_s18 }
  0x19   : > { %p780_p8 = pnand %p506_p6, %p36_p2  ;;  %s150_s22 = scalar_lea.sflag [#allocation4], %s149_s5 }
  0x1a   : > { %s578_s23 = sshra.s32 %s160_s16, 4  ;;  %s585_s28 = scalar_lea.hbm %s872_s0, 16  ;;  %s579_s23 = int_to_ptr.hbm [resolvable:$true] %s578_s23 }
  0x1b   : > { %s580_s24 = scalar_lea.hbm %s579_s23, 8  ;;  %p582_p9 = pneg %p780_p8 }
  0x1c   : > { %p581_p7 = scmp.ne.s32.totalorder %s579_s23, %s580_s24  ;;  %p586_p0 = scmp.lt.s32.totalorder %s579_s23, %s872_s0 }
  0x1d   : > { %p587_p2 = scmp.lt.s32.totalorder %s585_s28, %s580_s24 }
  0x1e   : > { %p583_p10 = pnand %p582_p9, %p581_p7 }
  0x1f   : > { %p588_p6 = por %p587_p2, %p586_p0 }
  0x20   : > { %p584_p11 = pneg %p583_p10 }
  0x22   : > { %p589_p5 = pnand %p588_p6, %p584_p11 }
  0x24   : > { %592 = shalt.err (!%p589_p5)
}
  0x25   : > { %500 = dma.hbm_to_vmem [thread:$0]  (!%p780_p8), %s160_s16, 128, %s162_s18, %s150_s22  }
  0x26   : > { %170 = sbr.rel (%p735_p3) target bundleno = 213 (0xd5), region = 32  ;;  %s797_s5 = sand.u32 (!%p735_p3), 1, %s670_s13  }
  0x27   : > { %s462_s9 = sshll.u32 (!%p735_p3), %s797_s5, 3  ;;  %s173_s10 = scalar_lea.sflag (!%p735_p3), [#allocation4], %s797_s5 }
  0x28   : > { %s801_s11 = scalar_lea.vmem (!%p735_p3), [#allocation3], %s462_s9 }
  0x2b   : > { %653 = dma.done.wait (%p762_p12), %s173_s10, 128  }
  0x2c   : > { %655 = vsyncadd (%p762_p12), %s173_s10, 4294967168 }
  0x2d   : > { %657 = dma.done.wait (%p41_p1), [#allocation7], 3072  }
  0x2e   : > { %659 = vsyncadd (%p41_p1), [#allocation7], 4294964224  ;;  %vm205_vm0 = vcmask 523264   ;;  %vm208_vm1 = vcmask 517120   ;;  %v683_v0 = vmov 0.0   ;;  %v316_v1 = vld [vmem:[#allocation6 + $0xb8] sm:$0xff] }
  0x2f   : > { %206 = vst.msk [vmem:[#allocation2] sm:$0xff] %vm205_vm0, %v683_v0  ;;  %v315_v2 = vld [vmem:[#allocation6 + $0xb0] sm:$0xff]  ;;  %v247_v3 = vld [vmem:[#allocation6 + $0x78] sm:$0xff]  ;;  %331 = vmatpush.msra.mxu2 %v316_v1  ;;  %v314_v6 = vld [vmem:[#allocation6 + $0xa8] sm:$0xff]  ;;  %vm211_vm2 = vcmask 516096   ;;  %s464_s20 = sshll.u32 %s797_s5, 4 }
  0x30   : > { %207 = vst.msk [vmem:[#allocation2 + $0x8] sm:$0xff] %vm205_vm0, %v683_v0  ;;  %262 = vmatpush.msra.mxu0 %v247_v3  ;;  %v236_v4 = vld [vmem:[#allocation6 + $0x38] sm:$0xff]  ;;  %v246_v5 = vld [vmem:[#allocation6 + $0x70] sm:$0xff]  ;;  %477 = vmatpush.msra.mxu3 %v247_v3  ;;  %v245_v8 = vld [vmem:[#allocation6 + $0x68] sm:$0xff]  ;;  %s476_s17 = sshll.u32 %s730_s19, 4  ;;  %s204_s23 = scalar_lea.vmem [#allocation8], %s464_s20 }
  0x31   : > { %209 = vst.msk [vmem:[#allocation2 + $0x10] sm:$0x3] %vm208_vm1, %v683_v0  ;;  %291 = vmatpush.msra.mxu1 %v236_v4  ;;  %v235_v7 = vld [vmem:[#allocation6 + $0x30] sm:$0xff]  ;;  %332 = vmatpush.msra.mxu2 %v315_v2  ;;  %v234_v9 = vld [vmem:[#allocation6 + $0x28] sm:$0xff]  ;;  %v313_v10 = vld [vmem:[#allocation6 + $0xa0] sm:$0xff]  ;;  %s368_s22 = scalar_lea.hbm %s875_s3, %s476_s17  ;;  %s369_s24 = sshll.u32 %s204_s23, 4  ;;  %s370_s24 = int_to_ptr.vmem [resolvable:$true] %s369_s24 }
  0x32   : > { %263 = vmatpush.msra.mxu0 %v246_v5  ;;  %478 = vmatpush.msra.mxu3 %v246_v5  ;;  %v244_v11 = vld [vmem:[#allocation6 + $0x60] sm:$0xff]  ;;  %v312_v12 = vld [vmem:[#allocation6 + $0x98] sm:$0xff]  ;;  %v311_v14 = vld [vmem:[#allocation6 + $0x90] sm:$0xff]  ;;  %s371_s25 = sshll.u32 %s368_s22, 4  ;;  %s357_s19 = scalar_lea.sflag [#allocation5], %s797_s5  ;;  %s372_s25 = int_to_ptr.hbm [resolvable:$true] %s371_s25 }
  0x33   : > { %292 = vmatpush.msra.mxu1 %v235_v7  ;;  %333 = vmatpush.msra.mxu2 %v314_v6  ;;  %v233_v13 = vld [vmem:[#allocation6 + $0x20] sm:$0xff]  ;;  %v243_v15 = vld [vmem:[#allocation6 + $0x58] sm:$0xff]  ;;  %v310_v20 = vld [vmem:[#allocation6 + $0x88] sm:$0xff]  ;;  %s622_s27 = sshra.s32 %s372_s25, 4  ;;  %s628_s9 = scalar_lea.hbm %s875_s3, 32  ;;  %s623_s27 = int_to_ptr.hbm [resolvable:$true] %s622_s27 }
  0x34   : > { %264 = vmatpush.msra.mxu0 %v245_v8  ;;  %479 = vmatpush.msra.mxu3 %v245_v8  ;;  %v232_v16 = vld [vmem:[#allocation6 + $0x18] sm:$0xff]  ;;  %v242_v21 = vld [vmem:[#allocation6 + $0x50] sm:$0xff]  ;;  %v241_v24 = vld [vmem:[#allocation6 + $0x48] sm:$0xff]  ;;  %s624_s28 = scalar_lea.hbm %s623_s27, 16  ;;  %p629_p12 = scmp.lt.s32.totalorder %s623_s27, %s875_s3 }
  0x35   : > { %293 = vmatpush.msra.mxu1 %v234_v9  ;;  %v213_v17 = vld [vmem:[%s801_s11 + $0x1] sm:$0x1]  ;;  %334 = vmatpush.msra.mxu2 %v313_v10  ;;  %v215_v18 = vld [vmem:[%s801_s11 + $0x2] sm:$0x1]  ;;  %v217_v19 = vld [vmem:[%s801_s11 + $0x3] sm:$0x1]  ;;  %p625_p1 = scmp.ne.s32.totalorder %s623_s27, %s624_s28  ;;  %p630_p8 = scmp.lt.s32.totalorder %s628_s9, %s624_s28 }
  0x36   : > { %265 = vmatpush.msra.mxu0 %v244_v11  ;;  %214 = vst.msk [vmem:[#allocation2 + $0x3] sm:$0x1] %vm211_vm2, %v213_v17  ;;  %480 = vmatpush.msra.mxu3 %v244_v11  ;;  %v231_v22 = vld [vmem:[#allocation6 + $0x10] sm:$0xff]  ;;  %v230_v25 = vld [vmem:[#allocation6 + $0x8] sm:$0xff]  ;;  %v309_v30 = vld [vmem:[#allocation6 + $0x80] sm:$0xff] }
  0x37   : > { %294 = vmatpush.msra.mxu1 %v233_v13  ;;  %216 = vst.msk [vmem:[#allocation2 + $0x5] sm:$0x1] %vm211_vm2, %v215_v18  ;;  %v219_v23 = vld [vmem:[%s801_s11 + $0x4] sm:$0x1]  ;;  %335 = vmatpush.msra.mxu2 %v312_v12  ;;  %v210_v26 = vld [vmem:[%s801_s11] sm:$0x1]  ;;  %p626_p3 = pnand %p625_p1, %p766_p13  ;;  %p631_p7 = por %p630_p8, %p629_p12 }
  0x38   : > { %266 = vmatpush.msra.mxu0 %v243_v15  ;;  %218 = vst.msk [vmem:[#allocation2 + $0x7] sm:$0x1] %vm211_vm2, %v217_v19  ;;  %481 = vmatpush.msra.mxu3 %v243_v15  ;;  %v221_v27 = vld [vmem:[%s801_s11 + $0x5] sm:$0x1]  ;;  %v223_v28 = vld [vmem:[%s801_s11 + $0x6] sm:$0x1] }
  0x39   : > { %295 = vmatpush.msra.mxu1 %v232_v16  ;;  %220 = vst.msk [vmem:[#allocation2 + $0x9] sm:$0x1] %vm211_vm2, %v219_v23  ;;  %336 = vmatpush.msra.mxu2 %v311_v14  ;;  %v225_v29 = vld [vmem:[%s801_s11 + $0x7] sm:$0x1]  ;;  %v240_v31 = vld [vmem:[#allocation6 + $0x40] sm:$0xff]  ;;  %p627_p5 = pneg %p626_p3 }
  0x3a   : > { %267 = vmatpush.msra.mxu0 %v242_v21  ;;  %212 = vst.msk [vmem:[#allocation2 + $0x1] sm:$0x1] %vm211_vm2, %v210_v26  ;;  %482 = vmatpush.msra.mxu3 %v242_v21  ;;  %v229_v32 = vld [vmem:[#allocation6] sm:$0xff]  ;;  %v547_v42 = vld [vmem:[%s874_s2] ss:$0 sm:$0xff] }
  0x3b   : > { %296 = vmatpush.msra.mxu1 %v231_v22  ;;  %222 = vst.msk [vmem:[#allocation2 + $0xb] sm:$0x1] %vm211_vm2, %v221_v27  ;;  %337 = vmatpush.msra.mxu2 %v310_v20  ;;  %p632_p9 = pnand %p631_p7, %p627_p5 }
  0x3c   : > { %268 = vmatpush.msra.mxu0 %v241_v24  ;;  %224 = vst.msk [vmem:[#allocation2 + $0xd] sm:$0x1] %vm211_vm2, %v223_v28  ;;  %483 = vmatpush.msra.mxu3 %v241_v24 }
  0x3d   : > { %297 = vmatpush.msra.mxu1 %v230_v25  ;;  %226 = vst.msk [vmem:[#allocation2 + $0xf] sm:$0x1] %vm211_vm2, %v225_v29  ;;  %338 = vmatpush.msra.mxu2 %v309_v30 }
  0x3e   : > { %269 = vmatpush.msra.mxu0 %v240_v31  ;;  %484 = vmatpush.msra.mxu3 %v240_v31 }
  0x3f   : > { %298 = vmatpush.msra.mxu1 %v229_v32 }
  0x40   : > { %v306_v33 = vld [vmem:[#allocation2 + $0x2] sm:$0xff] }
  0x41   : > { %469 = vmatmul.msk.f32.vlgmr.msra.gmra.mxu2 %vm205_vm0, %v306_v33  ;;  %v237_v34 = vld [vmem:[#allocation2 + $0x1] sm:$0xff] }
  0x42   : > { %v227_v35 = vld [vmem:[#allocation2] sm:$0xff]  ;;  %465 = vmatmul.msk.f32.vlgmr.msra.gmra.mxu0 %vm205_vm0, %v237_v34 }
  0x43   : > { %467 = vmatmul.msk.f32.vlgmr.msra.gmra.mxu1 %vm205_vm0, %v227_v35 }
  0x44   : > { %v238_v36 = vld [vmem:[#allocation2 + $0x9] sm:$0xff] }
  0x45   : > { %466 = vmatmul.msk.f32.vlgmr.msra.gmra.mxu3 %vm205_vm0, %v238_v36  ;;  %v307_v37 = vld [vmem:[#allocation2 + $0xa] sm:$0xff] }
  0x46   : > { %v228_v38 = vld [vmem:[#allocation2 + $0x8] sm:$0xff] }
  0x49   : > { %470 = vmatmul.msk.f32.gmra.mxu2 %vm205_vm0, %v307_v37 }
  0x4b   : > { %468 = vmatmul.msk.f32.gmra.mxu1 %vm205_vm0, %v228_v38 }
  0xbf   : > { %v271_v39 = vpop.f32.mrf.mxu0 }
  0xc0   : > { %v300_v40 = vpop.f32.mrf.mxu1 }
  0xc1   : > { %v301_v41 = vadd.f32 %v300_v40, %v271_v39 }
  0xc4   : > { %v340_v43 = vpop.f32.mrf.mxu2 }
  0xc5   : > { %v346_v44 = vadd.f32 %v340_v43, %v301_v41 }
  0xc7   : > { %v352_v45 = vadd.f32 %v547_v42, %v346_v44 }
  0xc8   : > { %v303_v46 = vpop.f32.mrf.mxu1  ;;  %v274_v47 = vpop.f32.mrf.mxu3 }
  0xc9   : > { %354 = vst [vmem:[%s204_s23] sm:$0xff] %v352_v45  ;;  %v304_v48 = vadd.f32 %v303_v46, %v274_v47 }
  0xcc   : > { %v343_v49 = vpop.f32.mrf.mxu2 }
  0xcd   : > { %v347_v50 = vadd.f32 %v343_v49, %v304_v48 }
  0xcf   : > { %v353_v51 = vadd.f32 %v547_v42, %v347_v50 }
  0xd1   : > { %355 = vst [vmem:[%s204_s23 + $0x8] sm:$0xff] %v353_v51 }
  0xd2   : > { %635 = shalt.err (!%p632_p9)
}
  0xd3   : > { %s684_s5 = smov 128   ;;  %s685_s20 = smov 8  }
  0xd4   : > { %491 = dma.vmem_to_hbm [thread:$0]  (%p766_p13), %s370_s24, 256, %s372_s25, %s357_s19, %s684_s5, %s684_s5, %s685_s20  }
  0xd5 PF: > { %s386_s30 = sand.u32 1, %s666_s12   ;;  %p881_p10 = scmp.ge.s32.totalorder %s678_s15, 2 }
  0xd6   : > { %s387_s16 = scalar_lea.sflag [#allocation5], %s386_s30 }
  0xd7   : > { %p502_p11 = pnand %p881_p10, %p771_p4 }
  0xd9   : > { %p503_p0 = pneg %p502_p11 }
  0xdb   : > { %661 = dma.done.wait (%p503_p0), %s387_s16, 256  }
  0xdc   : > { %663 = vsyncadd (%p503_p0), %s387_s16, 4294967040  ;;  %p17_p2 = scmp.ge.s32.totalorder %s746_s26, 4   ;;  %s882_s12 = smov %s670_s13 }
  0xdd   : > { %s883_s13 = smov %s674_s14  ;;  %s884_s14 = smov %s758_s29 }
  0xde   : > { %s885_s15 = smov %s746_s26  ;;  %19 = sbr.rel (!%p17_p2) target bundleno = 6 (0x6), region = 83 }
  0xe3   :  { %393 = vsyncpa [#allocation4], 1 }
  0xe4   :  { %395 = vsyncpa [#allocation4 + $0x1], 1 }
  0xe5   :  { %396 = vsyncpa [#allocation7], 1 }
  0xe6   :  { %397 = vsyncpa [#allocation5], 1 }
  0xe7   :  { %399 = vsyncpa [#allocation5 + $0x1], 1 }

</bundles_post_ra>
